<compile_context>
chip_gen: v5e
topology: v5e:2x2
jax: 0.10.0
libtpu: 0.0.40
codegen_flags: <defaults>
</compile_context>

<pallas_src>
import jax
import jax.numpy as jnp
from jax.experimental import pallas as pl
from jax.experimental.pallas import tpu as pltpu


# --------------------------------------------------------------------------- #
# Prologue: gamma/beta = 300 * tanh((cond @ W + b) / 300), computed once.
# --------------------------------------------------------------------------- #
def film_gamma_beta_kernel(cond_ref, wg_ref, bg_ref, wb_ref, bb_ref,
                           gamma_ref, beta_ref):
    cond = cond_ref[...].astype(jnp.float32)
    g = jnp.dot(cond, wg_ref[...], preferred_element_type=jnp.float32) + bg_ref[...]
    b = jnp.dot(cond, wb_ref[...], preferred_element_type=jnp.float32) + bb_ref[...]
    gamma_ref[...] = 300.0 * jnp.tanh(g * (1.0 / 300.0))
    beta_ref[...] = 300.0 * jnp.tanh(b * (1.0 / 300.0))


def _film_gamma_beta(cond, wg, bg, wb, bb):
    B, D = cond.shape
    C = wg.shape[1]
    bg2 = bg.reshape(1, C).astype(jnp.float32)
    bb2 = bb.reshape(1, C).astype(jnp.float32)
    return pl.pallas_call(
        film_gamma_beta_kernel,
        out_shape=(
            jax.ShapeDtypeStruct((B, C), jnp.float32),
            jax.ShapeDtypeStruct((B, C), jnp.float32),
        ),
        grid_spec=pltpu.PrefetchScalarGridSpec(
            num_scalar_prefetch=0,
            grid=(1,),
            in_specs=[
                pl.BlockSpec((B, D), lambda i: (0, 0)),
                pl.BlockSpec((D, C), lambda i: (0, 0)),
                pl.BlockSpec((1, C), lambda i: (0, 0)),
                pl.BlockSpec((D, C), lambda i: (0, 0)),
                pl.BlockSpec((1, C), lambda i: (0, 0)),
            ],
            out_specs=[
                pl.BlockSpec((B, C), lambda i: (0, 0)),
                pl.BlockSpec((B, C), lambda i: (0, 0)),
            ],
        ),
        compiler_params=pltpu.CompilerParams(dimension_semantics=("arbitrary",)),
    )(cond, wg, bg2, wb, bb2)


# --------------------------------------------------------------------------- #
# Hot loop: out = gs * x + bs  (gs/bs already include the learned scale).
# --------------------------------------------------------------------------- #
def film_apply_kernel(gs_ref, bs_ref, x_ref, out_ref):
    gs = gs_ref[...][:, None, :]          # (B, 1, C_eff)
    bs = bs_ref[...][:, None, :]          # (B, 1, C_eff)
    out_ref[...] = gs * x_ref[...] + bs   # (B, t_tile, C_eff)


def _pick_t_tile(B, T_eff, C_eff, itemsize, target_bytes):
    """Largest time-tile (multiple of 8, or the full extent) under target_bytes."""
    row_bytes = B * C_eff * itemsize
    if T_eff * row_bytes <= target_bytes:
        return T_eff
    max_rows = max(8, target_bytes // row_bytes)
    best = None
    r = 8
    while r <= min(T_eff, max_rows):
        if T_eff % r == 0:
            best = r
        r += 8
    # Fallback: whole extent in one block (no multiple-of-8 divisor available).
    return best if best is not None else T_eff


def film_forward(x, cond, wg, bg, wb, bb, scale, *,
                 compute_metrics=True, tile_target_bytes=2 << 20):
    """FiLM forward. Returns (result, text_metrics) like the PyTorch module."""
    B, T, C = x.shape

    # gamma/beta computed once (tiny), soft-clamped; scale folded in here so the
    # hot loop is a single mul+add per element.
    gamma, beta = _film_gamma_beta(cond, wg, bg, wb, bb)
    s = jnp.asarray(scale, jnp.float32)
    gs = (s * gamma).astype(x.dtype)
    bs = (s * beta).astype(x.dtype)

    # Lane-density folding: make the last block dim a multiple of 128 when possible
    # so stores are unmasked full-lane vst instead of masked vst.msk.
    if C < 128 and 128 % C == 0 and T % (128 // C) == 0:
        k = 128 // C
    else:
        k = 1
    T_eff, C_eff = T // k, C * k
    x_w = x.reshape(B, T_eff, C_eff)
    gs_w = jnp.tile(gs, (1, k)) if k > 1 else gs
    bs_w = jnp.tile(bs, (1, k)) if k > 1 else bs

    t_tile = _pick_t_tile(B, T_eff, C_eff, x.dtype.itemsize, tile_target_bytes)
    n_t = T_eff // t_tile

    result_w = pl.pallas_call(
        film_apply_kernel,
        out_shape=jax.ShapeDtypeStruct((B, T_eff, C_eff), x.dtype),
        grid_spec=pltpu.PrefetchScalarGridSpec(
            num_scalar_prefetch=0,
            grid=(n_t,),
            in_specs=[
                pl.BlockSpec((B, C_eff), lambda t: (0, 0)),          # gs
                pl.BlockSpec((B, C_eff), lambda t: (0, 0)),          # bs
                pl.BlockSpec((B, t_tile, C_eff), lambda t: (0, t, 0)),  # x tile
            ],
            out_specs=pl.BlockSpec((B, t_tile, C_eff), lambda t: (0, t, 0)),
        ),
        # No cross-iteration dependency left -> time axis can be sharded across
        # v7x's two TensorCores; neutral on v5e/v6e.
        compiler_params=pltpu.CompilerParams(dimension_semantics=("parallel",)),
    )(gs_w, bs_w, x_w)
    result = result_w.reshape(B, T, C)

    text_metrics = {}
    if compute_metrics:
        # gamma/beta stats come from the tiny (B, C) prologue outputs; |x| / |out|
        # do stream the big tensors once each, so this is gated behind the flag.
        vals = jnp.stack([
            jnp.min(gamma), jnp.max(gamma), jnp.min(beta), jnp.max(beta),
            jnp.mean(jnp.abs(x)).astype(jnp.float32),
            jnp.mean(jnp.abs(result)).astype(jnp.float32),
        ])
        vals = jax.device_get(vals)   # single host sync for all six metrics
        keys = ("film_gamma_min", "film_gamma_max", "film_beta_min",
                "film_beta_max", "film_input_magnitude", "film_output_magnitude")
        text_metrics = {kk: float(v) for kk, v in zip(keys, vals)}
    return result, text_metrics


if __name__ == "__main__":
    key = jax.random.PRNGKey(0)
    B, T, D, C = 2, 16, 32, 32   # batch, seq, condition_dim, feature_channels
    ks = jax.random.split(key, 6)

    x = jax.random.normal(ks[0], (B, T, C), jnp.float32)
    cond = jax.random.normal(ks[1], (B, D), jnp.float32)

    # Deterministic synthetic params, mimicking nn.Linear init bounds.
    # Stored directly as (in, out) = W.T relative to PyTorch's (out, in).
    bound = 1.0 / (D ** 0.5)
    wg = jax.random.uniform(ks[2], (D, C), jnp.float32, -bound, bound)
    bg = jax.random.uniform(ks[3], (C,), jnp.float32, -bound, bound)
    wb = jax.random.uniform(ks[4], (D, C), jnp.float32, -bound, bound)
    bb = jax.random.uniform(ks[5], (C,), jnp.float32, -bound, bound)
    scale = jnp.float32(0.05)    # init_scale parameter

    result, metrics = film_forward(x, cond, wg, bg, wb, bb, scale)
    jax.block_until_ready(result)

    # Pure-JAX reference check of the forward semantics.
    gamma_r = 300.0 * jnp.tanh((cond @ wg + bg) / 300.0)[:, None, :]
    beta_r = 300.0 * jnp.tanh((cond @ wb + bb) / 300.0)[:, None, :]
    ref = scale * (gamma_r * x + beta_r)
    assert jnp.allclose(result, ref, atol=1e-5, rtol=1e-5), "mismatch vs reference"
    assert len(metrics) == 6

    print("KERNEL_OK")
</pallas_src>

<mosaic_0001>
module attributes {stable_mosaic.version = 11 : i64} {
  func.func @film_gamma_beta_kernel(%arg0: i32, %arg1: memref<2x32xf32, #tpu.memory_space<vmem>>, %arg2: memref<32x32xf32, #tpu.memory_space<vmem>>, %arg3: memref<1x32xf32, #tpu.memory_space<vmem>>, %arg4: memref<32x32xf32, #tpu.memory_space<vmem>>, %arg5: memref<1x32xf32, #tpu.memory_space<vmem>>, %arg6: memref<2x32xf32, #tpu.memory_space<vmem>>, %arg7: memref<2x32xf32, #tpu.memory_space<vmem>>) attributes {dimension_semantics = [#tpu.dimension_semantics<arbitrary>], iteration_bounds = array<i64: 1>, scalar_prefetch = 0 : i64, scratch_operands = 0 : i64, tpu.core_type = #tpu.core_type<tc>, window_params = [{pipeline_mode = #tpu.pipeline_mode<synchronous>, transform_indices = @transform_0, window_bounds = array<i64: 2, 32>}, {pipeline_mode = #tpu.pipeline_mode<synchronous>, transform_indices = @transform_1, window_bounds = array<i64: 32, 32>}, {pipeline_mode = #tpu.pipeline_mode<synchronous>, transform_indices = @transform_2, window_bounds = array<i64: 1, 32>}, {pipeline_mode = #tpu.pipeline_mode<synchronous>, transform_indices = @transform_3, window_bounds = array<i64: 32, 32>}, {pipeline_mode = #tpu.pipeline_mode<synchronous>, transform_indices = @transform_4, window_bounds = array<i64: 1, 32>}, {pipeline_mode = #tpu.pipeline_mode<synchronous>, transform_indices = @transform_5, window_bounds = array<i64: 2, 32>}, {pipeline_mode = #tpu.pipeline_mode<synchronous>, transform_indices = @transform_6, window_bounds = array<i64: 2, 32>}]} {
    %c0 = arith.constant 0 : index
    %c0_0 = arith.constant 0 : index
    %0 = vector.load %arg1[%c0, %c0_0] : memref<2x32xf32, #tpu.memory_space<vmem>>, vector<2x32xf32>
    %c0_1 = arith.constant 0 : index
    %c0_2 = arith.constant 0 : index
    %1 = vector.load %arg2[%c0_1, %c0_2] : memref<32x32xf32, #tpu.memory_space<vmem>>, vector<32x32xf32>
    %cst = arith.constant dense<0.000000e+00> : vector<2x32xf32>
    %2 = tpu.matmul %0, %1, %cst {dimension_numbers = #tpu.dot_dimension_numbers<[1], [0], [0], [1], [0, 0, 1, 1], [], []>} : vector<2x32xf32>, vector<32x32xf32>, vector<2x32xf32> -> vector<2x32xf32>
    %c0_3 = arith.constant 0 : index
    %c0_4 = arith.constant 0 : index
    %3 = vector.load %arg3[%c0_3, %c0_4] : memref<1x32xf32, #tpu.memory_space<vmem>>, vector<1x32xf32>
    %4 = vector.broadcast %3 : vector<1x32xf32> to vector<2x32xf32>
    %5 = arith.addf %2, %4 : vector<2x32xf32>
    %c0_5 = arith.constant 0 : index
    %c0_6 = arith.constant 0 : index
    %6 = vector.load %arg4[%c0_5, %c0_6] : memref<32x32xf32, #tpu.memory_space<vmem>>, vector<32x32xf32>
    %cst_7 = arith.constant dense<0.000000e+00> : vector<2x32xf32>
    %7 = tpu.matmul %0, %6, %cst_7 {dimension_numbers = #tpu.dot_dimension_numbers<[1], [0], [0], [1], [0, 0, 1, 1], [], []>} : vector<2x32xf32>, vector<32x32xf32>, vector<2x32xf32> -> vector<2x32xf32>
    %c0_8 = arith.constant 0 : index
    %c0_9 = arith.constant 0 : index
    %8 = vector.load %arg5[%c0_8, %c0_9] : memref<1x32xf32, #tpu.memory_space<vmem>>, vector<1x32xf32>
    %9 = vector.broadcast %8 : vector<1x32xf32> to vector<2x32xf32>
    %10 = arith.addf %7, %9 : vector<2x32xf32>
    %cst_10 = arith.constant 0.00333333341 : f32
    %11 = vector.broadcast %cst_10 : f32 to vector<2x32xf32>
    %12 = arith.mulf %5, %11 : vector<2x32xf32>
    %13 = math.tanh %12 : vector<2x32xf32>
    %cst_11 = arith.constant 3.000000e+02 : f32
    %14 = vector.broadcast %cst_11 : f32 to vector<2x32xf32>
    %15 = arith.mulf %14, %13 : vector<2x32xf32>
    %c0_12 = arith.constant 0 : index
    %c0_13 = arith.constant 0 : index
    %16 = vector.load %arg6[%c0_12, %c0_13] : memref<2x32xf32, #tpu.memory_space<vmem>>, vector<2x32xf32>
    tpu.vector_store %arg6[%c0_12, %c0_13], %15 {strides = array<i32>} : memref<2x32xf32, #tpu.memory_space<vmem>>, vector<2x32xf32>,
    %cst_14 = arith.constant 0.00333333341 : f32
    %17 = vector.broadcast %cst_14 : f32 to vector<2x32xf32>
    %18 = arith.mulf %10, %17 : vector<2x32xf32>
    %19 = math.tanh %18 : vector<2x32xf32>
    %cst_15 = arith.constant 3.000000e+02 : f32
    %20 = vector.broadcast %cst_15 : f32 to vector<2x32xf32>
    %21 = arith.mulf %20, %19 : vector<2x32xf32>
    %c0_16 = arith.constant 0 : index
    %c0_17 = arith.constant 0 : index
    %22 = vector.load %arg7[%c0_16, %c0_17] : memref<2x32xf32, #tpu.memory_space<vmem>>, vector<2x32xf32>
    tpu.vector_store %arg7[%c0_16, %c0_17], %21 {strides = array<i32>} : memref<2x32xf32, #tpu.memory_space<vmem>>, vector<2x32xf32>,
    return
  }
  func.func @transform_0(%arg0: i32) -> (i32, i32) {
    %c0_i32 = arith.constant 0 : i32
    %c0_i32_0 = arith.constant 0 : i32
    %c0_i32_1 = arith.constant 0 : i32
    return %c0_i32, %c0_i32_0 : i32, i32
  }
  func.func @transform_1(%arg0: i32) -> (i32, i32) {
    %c0_i32 = arith.constant 0 : i32
    %c0_i32_0 = arith.constant 0 : i32
    %c0_i32_1 = arith.constant 0 : i32
    return %c0_i32, %c0_i32_0 : i32, i32
  }
  func.func @transform_2(%arg0: i32) -> (i32, i32) {
    %c0_i32 = arith.constant 0 : i32
    %c0_i32_0 = arith.constant 0 : i32
    %c0_i32_1 = arith.constant 0 : i32
    return %c0_i32, %c0_i32_0 : i32, i32
  }
  func.func @transform_3(%arg0: i32) -> (i32, i32) {
    %c0_i32 = arith.constant 0 : i32
    %c0_i32_0 = arith.constant 0 : i32
    %c0_i32_1 = arith.constant 0 : i32
    return %c0_i32, %c0_i32_0 : i32, i32
  }
  func.func @transform_4(%arg0: i32) -> (i32, i32) {
    %c0_i32 = arith.constant 0 : i32
    %c0_i32_0 = arith.constant 0 : i32
    %c0_i32_1 = arith.constant 0 : i32
    return %c0_i32, %c0_i32_0 : i32, i32
  }
  func.func @transform_5(%arg0: i32) -> (i32, i32) {
    %c0_i32 = arith.constant 0 : i32
    %c0_i32_0 = arith.constant 0 : i32
    %c0_i32_1 = arith.constant 0 : i32
    return %c0_i32, %c0_i32_0 : i32, i32
  }
  func.func @transform_6(%arg0: i32) -> (i32, i32) {
    %c0_i32 = arith.constant 0 : i32
    %c0_i32_0 = arith.constant 0 : i32
    %c0_i32_1 = arith.constant 0 : i32
    return %c0_i32, %c0_i32_0 : i32, i32
  }
}

</mosaic_0001>

<bundles_post_ra>
// kernel: tpu_custom_call.1
= control target key start
LH: loop header
LB: loop body
LE: loop exit
PB: predicated region body
PF: predicated region fallthrough
CT: control target
= control target key end

     0   :  { %12 = vsyncpa [#allocation3], 0  ;;  %s379_s0 = inlined_call_operand.hbm [shape: f32[2,32], index: 0, kind: input, shape index: {}]   ;;  %s380_s1 = inlined_call_operand.hbm [shape: f32[32,32], index: 1, kind: input, shape index: {}]   ;;  %s381_s2 = inlined_call_operand.vmem [shape: f32[1,32], index: 2, kind: input, shape index: {}]   ;;  %s382_s3 = inlined_call_operand.hbm [shape: f32[32,32], index: 3, kind: input, shape index: {}]   ;;  %s383_s4 = inlined_call_operand.vmem [shape: f32[1,32], index: 4, kind: input, shape index: {}]   ;;  %s384_s5 = inlined_call_operand.hbm [shape: f32[2,32], index: 5, kind: output, shape index: {0}]   ;;  %s385_s6 = inlined_call_operand.hbm [shape: f32[2,32], index: 6, kind: output, shape index: {1}]  }
   0x1   :  { %13 = vsyncpa [#allocation6], 0 }
   0x2   :  { %14 = vsyncpa [#allocation4], 0  ;;  %s31_s23 = sshll.u32 %s380_s1, 4  ;;  %s32_s23 = int_to_ptr.hbm [resolvable:$true] %s31_s23 }
   0x3   :  { %15 = vsyncpa [#allocation10], 0  ;;  %s316_s24 = smov [#allocation5]   ;;  %s21_s28 = sshll.u32 %s379_s0, 4  ;;  %s22_s28 = int_to_ptr.hbm [resolvable:$true] %s21_s28 }
   0x4   :  { %s33_s25 = sshll.u32 %s316_s24, 4  ;;  %s317_s29 = smov 128   ;;  %s34_s25 = int_to_ptr.vmem [resolvable:$true] %s33_s25 }
   0x5   :  { %s318_s30 = smov 8   ;;  %s319_s7 = smov [#allocation2]  }
   0x6   :  { %39 = dma.hbm_to_vmem [thread:$0]  %s32_s23, 512, %s34_s25, [#allocation6], %s317_s29, %s317_s29, %s318_s30  }
   0x7   :  { %s23_s8 = sshll.u32 %s319_s7, 4  ;;  %s46_s11 = sshll.u32 %s382_s3, 4  ;;  %s24_s8 = int_to_ptr.vmem [resolvable:$true] %s23_s8  ;;  %s47_s11 = int_to_ptr.hbm [resolvable:$true] %s46_s11 }
   0x8   :  { %26 = dma.hbm_to_vmem [thread:$0]  %s22_s28, 32, %s24_s8, [#allocation3]  }
   0x9   :  { %s320_s1 = smov [#allocation7]  }
   0xa   :  { %s48_s12 = sshll.u32 %s320_s1, 4  ;;  %s49_s12 = int_to_ptr.vmem [resolvable:$true] %s48_s12 }
   0xb   :  { %54 = dma.hbm_to_vmem [thread:$0]  %s47_s11, 512, %s49_s12, [#allocation6], %s317_s29, %s317_s29, %s318_s30  }
   0xc   :  { %308 = dma.done.wait [#allocation3], 32  }
   0xd   :  { %309 = vsyncadd [#allocation3], 4294967264 }
   0xe   :  { %310 = dma.done.wait [#allocation6], 1024  }
   0xf   :  { %311 = vsyncadd [#allocation6], 4294966272  ;;  %v73_v0 = vld [vmem:[#allocation5 + $0x18] sm:$0xff]  ;;  %v72_v2 = vld [vmem:[#allocation5 + $0x10] sm:$0xff]  ;;  %vm78_vm0 = vcmask 261120   ;;  %s321_s15 = smov [#allocation8]  }
  0x10   :  { %v105_v1 = vld [vmem:[#allocation7 + $0x18] sm:$0xff]  ;;  %94 = vmatpush.msra.mxu0 %v73_v0  ;;  %v104_v3 = vld [vmem:[#allocation7 + $0x10] sm:$0xff]  ;;  %v71_v4 = vld [vmem:[#allocation5 + $0x8] sm:$0xff]  ;;  %s144_s16 = sshll.u32 %s321_s15, 4  ;;  %s146_s19 = sshll.u32 %s384_s5, 4  ;;  %vm133_vm1 = vcmask 254976   ;;  %s145_s16 = int_to_ptr.vmem [resolvable:$true] %s144_s16  ;;  %s147_s19 = int_to_ptr.hbm [resolvable:$true] %s146_s19 }
  0x11   :  { %122 = vmatpush.msra.mxu1 %v105_v1  ;;  %v103_v5 = vld [vmem:[#allocation7 + $0x8] sm:$0xff]  ;;  %v70_v6 = vld [vmem:[#allocation5] sm:$0xff]  ;;  %v69_v8 = vld [vmem:[#allocation2] sm:$0x3]  ;;  %s322_s20 = smov [#allocation9]  }
  0x12   :  { %95 = vmatpush.msra.mxu0 %v72_v2  ;;  %v102_v7 = vld [vmem:[#allocation7] sm:$0xff]  ;;  %v182_v9 = vld [vmem:[%s381_s2] ss:$0 sm:$0xff]  ;;  %s155_s2 = sshll.u32 %s322_s20, 4  ;;  %s156_s2 = int_to_ptr.vmem [resolvable:$true] %s155_s2 }
  0x13   :  { %123 = vmatpush.msra.mxu1 %v104_v3  ;;  %v183_v10 = vld [vmem:[%s383_s4] ss:$0 sm:$0xff]  ;;  %s157_s4 = sshll.u32 %s385_s6, 4  ;;  %s158_s4 = int_to_ptr.hbm [resolvable:$true] %s157_s4 }
  0x14   :  { %96 = vmatpush.msra.mxu0 %v71_v4 }
  0x15   :  { %124 = vmatpush.msra.mxu1 %v103_v5 }
  0x16   :  { %97 = vmatpush.msra.mxu0 %v70_v6 }
  0x17   :  { %125 = vmatpush.msra.mxu1 %v102_v7  ;;  %173 = vmatmul.msk.f32.vlgmr.msra.gmra.mxu0 %vm78_vm0, %v69_v8 }
  0x18   :  { %174 = vmatmul.msk.f32.vlgmr.msra.gmra.mxu1 %vm78_vm0, %v69_v8 }
  0x94   :  { %v99_v11 = vpop.f32.mrf.mxu0 }
  0x95   :  { %v127_v12 = vpop.f32.mrf.mxu1  ;;  %v100_v13 = vadd.f32 %v182_v9, %v99_v11 }
  0x96   :  { %v128_v14 = vadd.f32 %v183_v10, %v127_v12 }
  0x97   :  { %v130_v15 = vmul.f32 0.0033333334, %v100_v13 }
  0x98   :  { %v135_v16 = vmul.f32 0.0033333334, %v128_v14 }
  0x99   :  { %184 = vtanh.f32 %v130_v15 }
  0x9a   :  { %186 = vtanh.f32 %v135_v16 }
  0x9f   :  { %v185_v17 = vpop.eup %184 }
  0xa0   :  { %v187_v18 = vpop.eup %186  ;;  %v132_v19 = vmul.f32 300.0, %v185_v17 }
  0xa1   :  { %v137_v20 = vmul.f32 300.0, %v187_v18 }
  0xa2   :  { %134 = vst.msk [vmem:[#allocation8] sm:$0x3] %vm133_vm1, %v132_v19 }
  0xa3   :  { %149 = dma.vmem_to_hbm [thread:$0]  %s145_s16, 32, %s147_s19, [#allocation4]   ;;  %138 = vst.msk [vmem:[#allocation9] sm:$0x3] %vm133_vm1, %v137_v20 }
  0xa4   :  { %160 = dma.vmem_to_hbm [thread:$0]  %s156_s2, 32, %s158_s4, [#allocation10]  }
  0xa5   :  { %312 = dma.done.wait [#allocation4], 32  }
  0xa6   :  { %313 = vsyncadd [#allocation4], 4294967264 }
  0xa7   :  { %314 = dma.done.wait [#allocation10], 32  }
  0xa8   :  { %315 = vsyncadd [#allocation10], 4294967264 }
  0xa9   :  { %169 = vsyncpa [#allocation3], 1 }
  0xaa   :  { %170 = vsyncpa [#allocation6], 1 }
  0xab   :  { %171 = vsyncpa [#allocation4], 1 }
  0xac   :  { %172 = vsyncpa [#allocation10], 1 }

</bundles_post_ra>
